<compile_context>
chip_gen: v5e
topology: v5e:2x2
jax: 0.10.0
libtpu: 0.0.40
codegen_flags: <defaults>
</compile_context>

<pallas_src>
import jax
import jax.numpy as jnp
from jax.experimental import pallas as pl
from jax.experimental.pallas import tpu as pltpu


def _round_up(n, m):
    return ((n + m - 1) // m) * m


def _bayesian_net_kernel(x_ref, w1_ref, b1_ref, w2_ref, b2_ref,
                         w3_ref, b3_ref, w4_ref, b4_ref, o_ref):
    # fc1 (+ folded bn1) + relu. x streams in as f32; cast to bf16 on the VPU
    # right before the MXU (hides under DMA, avoids a wrapper-side HBM pass).
    x = x_ref[...].astype(jnp.bfloat16)
    h = jnp.dot(x, w1_ref[...], preferred_element_type=jnp.float32)
    h = jnp.maximum(h + b1_ref[...], 0.0)
    # fc2 (+ folded bn2) + relu     (dropout == identity in eval mode)
    h = jnp.dot(h.astype(w2_ref.dtype), w2_ref[...],
                preferred_element_type=jnp.float32)
    h = jnp.maximum(h + b2_ref[...], 0.0)
    # fc3 (+ folded bn3) + relu
    h = jnp.dot(h.astype(w3_ref.dtype), w3_ref[...],
                preferred_element_type=jnp.float32)
    h = jnp.maximum(h + b3_ref[...], 0.0)
    # fc4 (out_features == 1): VPU multiply + cross-lane (XLU) reduce instead
    # of wasting 127/128 MXU output lanes; 1/temperature already folded in.
    logits = jnp.sum(h * w4_ref[...], axis=-1, keepdims=True) + b4_ref[0]
    # Numerically stable sigmoid: exp argument is always <= 0, so the approx
    # EUP reciprocal's operand stays in (1, 2] — no inf/denormal corner cases,
    # even for the uninitialized rows of a ragged (masked-on-write) tile.
    z = jnp.exp(-jnp.abs(logits))
    p = pl.reciprocal(1.0 + z, approx=True)
    o_ref[...] = jnp.where(logits >= 0.0, p, 1.0 - p)


def bayesian_net_forward(x, params, *, block_rows=2048):
    """x: (B, window_size) f32. params: dict of prepped (W, b) per layer."""
    B, K = x.shape
    w1, b1 = params["fc1"]
    w2, b2 = params["fc2"]
    w3, b3 = params["fc3"]
    w4, b4 = params["fc4"]

    # Balanced batch tiling: split the real rows evenly across tiles, round
    # the step count up to an even number when >1 so v7x's 2 TensorCores get
    # comparable work, and keep each tile a multiple of 8 sublanes.
    steps = pl.cdiv(B, block_rows)
    if steps > 1 and steps % 2 == 1:
        steps += 1
    tm = min(_round_up(pl.cdiv(B, steps), 8), _round_up(B, 8))
    grid = pl.cdiv(B, tm)

    resident = lambda a: pl.BlockSpec(a.shape, lambda i: (0, 0))

    weight_bytes = sum(int(a.size) * a.dtype.itemsize
                       for a in (w1, b1, w2, b2, w3, b3, w4, b4))
    cost = pl.CostEstimate(
        flops=2 * B * (K * 256 + 256 * 128 + 128 * 64 + 64),
        transcendentals=B,  # one exp per row (reciprocal is EUP too)
        bytes_accessed=int(x.size) * x.dtype.itemsize + B * 4 + weight_bytes,
    )

    out = pl.pallas_call(
        _bayesian_net_kernel,
        grid=(grid,),
        out_shape=jax.ShapeDtypeStruct((B, 1), jnp.float32),
        in_specs=[
            pl.BlockSpec((tm, K), lambda i: (i, 0)),            # x streams
            resident(w1), resident(b1),                          # weights stay
            resident(w2), resident(b2),                          # VMEM-resident
            resident(w3), resident(b3),
            resident(w4),
            pl.BlockSpec(memory_space=pltpu.MemorySpace.SMEM),   # b4 scalar
        ],
        out_specs=pl.BlockSpec((tm, 1), lambda i: (i, 0)),
        compiler_params=pltpu.CompilerParams(
            dimension_semantics=("parallel",)),  # shard batch over v7x's 2 TCs
        cost_estimate=cost,
    )(x, w1, b1, w2, b2, w3, b3, w4, b4)
    return out


def _init_linear(key, fan_in, fan_out):
    """Deterministic init mimicking nn.Linear's uniform(-1/sqrt(fan_in), ...)."""
    kw, kb = jax.random.split(key)
    bound = 1.0 / jnp.sqrt(fan_in)
    # Stored as (in, out) so the kernel does x @ W.
    w = jax.random.uniform(kw, (fan_in, fan_out), jnp.float32, -bound, bound)
    b = jax.random.uniform(kb, (1, fan_out), jnp.float32, -bound, bound)
    return w, b


def _init_bn(key, features):
    """Deterministic, non-trivial BatchNorm1d eval-mode parameters."""
    kg, kb, km, kv = jax.random.split(key, 4)
    gamma = 1.0 + 0.1 * jax.random.normal(kg, (features,), jnp.float32)
    beta = 0.1 * jax.random.normal(kb, (features,), jnp.float32)
    running_mean = 0.1 * jax.random.normal(km, (features,), jnp.float32)
    running_var = 1.0 + 0.1 * jax.random.uniform(kv, (features,), jnp.float32)
    return gamma, beta, running_mean, running_var


def _fold_bn(w, b, bn, eps=1e-5):
    """Fold eval-mode BN into the preceding linear: y = (xW+b)*s + t."""
    gamma, beta, mean, var = bn
    scale = gamma / jnp.sqrt(var + eps)
    shift = beta - mean * scale
    return w * scale[None, :], b * scale[None, :] + shift[None, :]


def make_params(key, window_size, temperature):
    keys = jax.random.split(key, 7)
    w1, b1 = _init_linear(keys[0], window_size, 256)
    w2, b2 = _init_linear(keys[1], 256, 128)
    w3, b3 = _init_linear(keys[2], 128, 64)
    w4, b4 = _init_linear(keys[3], 64, 1)
    w1, b1 = _fold_bn(w1, b1, _init_bn(keys[4], 256))
    w2, b2 = _fold_bn(w2, b2, _init_bn(keys[5], 128))
    w3, b3 = _fold_bn(w3, b3, _init_bn(keys[6], 64))
    # Fold 1/temperature into fc4; keep w4 as a (1, 64) f32 row for the VPU
    # reduce and b4 as a length-1 f32 SMEM scalar.
    w4_row = (w4 / temperature).T.astype(jnp.float32)           # (1, 64)
    b4_scalar = (b4 / temperature).reshape(1).astype(jnp.float32)
    return {
        "fc1": (w1.astype(jnp.bfloat16), b1),   # bf16 weights, f32 biases
        "fc2": (w2.astype(jnp.bfloat16), b2),
        "fc3": (w3.astype(jnp.bfloat16), b3),
        "fc4": (w4_row, b4_scalar),
    }


def bayesian_net_ref(x, params):
    """Pure-JAX reference using the same (bf16) params as the kernel."""
    w1, b1 = params["fc1"]
    w2, b2 = params["fc2"]
    w3, b3 = params["fc3"]
    w4, b4 = params["fc4"]
    f32 = jnp.float32
    h = x.astype(jnp.bfloat16).astype(f32)
    h = jnp.maximum(h @ w1.astype(f32) + b1, 0.0)
    h = jnp.maximum(h.astype(jnp.bfloat16).astype(f32) @ w2.astype(f32) + b2, 0.0)
    h = jnp.maximum(h.astype(jnp.bfloat16).astype(f32) @ w3.astype(f32) + b3, 0.0)
    logits = jnp.sum(h * w4, axis=-1, keepdims=True) + b4[0]
    return jax.nn.sigmoid(logits)


if __name__ == "__main__":
    window_size = 32
    temperature = 2.0
    # dropout = 0.25 -> identity in eval mode.

    key = jax.random.PRNGKey(0)
    k_params, k_x = jax.random.split(key)
    params = make_params(k_params, window_size, temperature)

    # (batch, block_rows) cases:
    #   (8, default)    -> single tiny tile, exact block
    #   (700, default)  -> single ragged tile (704-row block, masked write)
    #   (700, 256)      -> 4 balanced 176-row tiles, ragged last block,
    #                      multi-step "parallel" grid
    for batch, br in ((8, None), (700, None), (700, 256)):
        kx = jax.random.fold_in(k_x, batch)
        x = jax.random.normal(kx, (batch, window_size), jnp.float32)
        if br is None:
            out = bayesian_net_forward(x, params)
        else:
            out = bayesian_net_forward(x, params, block_rows=br)
        out = jax.block_until_ready(out)
        assert out.shape == (batch, 1)
        assert bool(jnp.all((out >= 0.0) & (out <= 1.0)))
        ref = bayesian_net_ref(x, params)
        max_err = float(jnp.max(jnp.abs(out - ref)))
        assert bool(jnp.allclose(out, ref, atol=2e-3, rtol=2e-3)), max_err
    print("KERNEL_OK")
</pallas_src>

<mosaic_0001>
module attributes {stable_mosaic.version = 11 : i64} {
  func.func @_bayesian_net_kernel(%arg0: i32, %arg1: memref<8x32xf32, #tpu.memory_space<vmem>>, %arg2: memref<32x256xbf16, #tpu.memory_space<vmem>>, %arg3: memref<1x256xf32, #tpu.memory_space<vmem>>, %arg4: memref<256x128xbf16, #tpu.memory_space<vmem>>, %arg5: memref<1x128xf32, #tpu.memory_space<vmem>>, %arg6: memref<128x64xbf16, #tpu.memory_space<vmem>>, %arg7: memref<1x64xf32, #tpu.memory_space<vmem>>, %arg8: memref<1x64xf32, #tpu.memory_space<vmem>>, %arg9: memref<1xf32, #tpu.memory_space<smem>>, %arg10: memref<8x1xf32, #tpu.memory_space<vmem>>) attributes {dimension_semantics = [#tpu.dimension_semantics<parallel>], iteration_bounds = array<i64: 1>, scalar_prefetch = 0 : i64, scratch_operands = 0 : i64, tpu.core_type = #tpu.core_type<tc>, window_params = [{transform_indices = @transform_0, window_bounds = array<i64: 8, 32>}, {pipeline_mode = #tpu.pipeline_mode<synchronous>, transform_indices = @transform_1, window_bounds = array<i64: 32, 256>}, {pipeline_mode = #tpu.pipeline_mode<synchronous>, transform_indices = @transform_2, window_bounds = array<i64: 1, 256>}, {pipeline_mode = #tpu.pipeline_mode<synchronous>, transform_indices = @transform_3, window_bounds = array<i64: 256, 128>}, {pipeline_mode = #tpu.pipeline_mode<synchronous>, transform_indices = @transform_4, window_bounds = array<i64: 1, 128>}, {pipeline_mode = #tpu.pipeline_mode<synchronous>, transform_indices = @transform_5, window_bounds = array<i64: 128, 64>}, {pipeline_mode = #tpu.pipeline_mode<synchronous>, transform_indices = @transform_6, window_bounds = array<i64: 1, 64>}, {pipeline_mode = #tpu.pipeline_mode<synchronous>, transform_indices = @transform_7, window_bounds = array<i64: 1, 64>}, {transform_indices = @transform_8, window_bounds = array<i64: 1>}, {transform_indices = @transform_9, window_bounds = array<i64: 8, 1>}]} {
    %c0 = arith.constant 0 : index
    %c0_0 = arith.constant 0 : index
    %0 = vector.load %arg1[%c0, %c0_0] : memref<8x32xf32, #tpu.memory_space<vmem>>, vector<8x32xf32>
    %1 = arith.truncf %0 : vector<8x32xf32> to vector<8x32xbf16>
    %c0_1 = arith.constant 0 : index
    %c0_2 = arith.constant 0 : index
    %2 = vector.load %arg2[%c0_1, %c0_2] : memref<32x256xbf16, #tpu.memory_space<vmem>>, vector<32x256xbf16>
    %cst = arith.constant dense<0.000000e+00> : vector<8x256xf32>
    %3 = tpu.matmul %1, %2, %cst {dimension_numbers = #tpu.dot_dimension_numbers<[1], [0], [0], [1], [0, 0, 1, 1], [], []>} : vector<8x32xbf16>, vector<32x256xbf16>, vector<8x256xf32> -> vector<8x256xf32>
    %c0_3 = arith.constant 0 : index
    %c0_4 = arith.constant 0 : index
    %4 = vector.load %arg3[%c0_3, %c0_4] : memref<1x256xf32, #tpu.memory_space<vmem>>, vector<1x256xf32>
    %5 = vector.broadcast %4 : vector<1x256xf32> to vector<8x256xf32>
    %6 = arith.addf %3, %5 : vector<8x256xf32>
    %cst_5 = arith.constant 0.000000e+00 : f32
    %7 = vector.broadcast %cst_5 : f32 to vector<8x256xf32>
    %8 = arith.maximumf %6, %7 : vector<8x256xf32>
    %9 = arith.truncf %8 : vector<8x256xf32> to vector<8x256xbf16>
    %c0_6 = arith.constant 0 : index
    %c0_7 = arith.constant 0 : index
    %10 = vector.load %arg4[%c0_6, %c0_7] : memref<256x128xbf16, #tpu.memory_space<vmem>>, vector<256x128xbf16>
    %cst_8 = arith.constant dense<0.000000e+00> : vector<8x128xf32>
    %11 = tpu.matmul %9, %10, %cst_8 {dimension_numbers = #tpu.dot_dimension_numbers<[1], [0], [0], [1], [0, 0, 1, 1], [], []>} : vector<8x256xbf16>, vector<256x128xbf16>, vector<8x128xf32> -> vector<8x128xf32>
    %c0_9 = arith.constant 0 : index
    %c0_10 = arith.constant 0 : index
    %12 = vector.load %arg5[%c0_9, %c0_10] : memref<1x128xf32, #tpu.memory_space<vmem>>, vector<1x128xf32>
    %13 = vector.broadcast %12 : vector<1x128xf32> to vector<8x128xf32>
    %14 = arith.addf %11, %13 : vector<8x128xf32>
    %cst_11 = arith.constant 0.000000e+00 : f32
    %15 = vector.broadcast %cst_11 : f32 to vector<8x128xf32>
    %16 = arith.maximumf %14, %15 : vector<8x128xf32>
    %17 = arith.truncf %16 : vector<8x128xf32> to vector<8x128xbf16>
    %c0_12 = arith.constant 0 : index
    %c0_13 = arith.constant 0 : index
    %18 = vector.load %arg6[%c0_12, %c0_13] : memref<128x64xbf16, #tpu.memory_space<vmem>>, vector<128x64xbf16>
    %cst_14 = arith.constant dense<0.000000e+00> : vector<8x64xf32>
    %19 = tpu.matmul %17, %18, %cst_14 {dimension_numbers = #tpu.dot_dimension_numbers<[1], [0], [0], [1], [0, 0, 1, 1], [], []>} : vector<8x128xbf16>, vector<128x64xbf16>, vector<8x64xf32> -> vector<8x64xf32>
    %c0_15 = arith.constant 0 : index
    %c0_16 = arith.constant 0 : index
    %20 = vector.load %arg7[%c0_15, %c0_16] : memref<1x64xf32, #tpu.memory_space<vmem>>, vector<1x64xf32>
    %21 = vector.broadcast %20 : vector<1x64xf32> to vector<8x64xf32>
    %22 = arith.addf %19, %21 : vector<8x64xf32>
    %cst_17 = arith.constant 0.000000e+00 : f32
    %23 = vector.broadcast %cst_17 : f32 to vector<8x64xf32>
    %24 = arith.maximumf %22, %23 : vector<8x64xf32>
    %c0_18 = arith.constant 0 : index
    %c0_19 = arith.constant 0 : index
    %25 = vector.load %arg8[%c0_18, %c0_19] : memref<1x64xf32, #tpu.memory_space<vmem>>, vector<1x64xf32>
    %26 = vector.broadcast %25 : vector<1x64xf32> to vector<8x64xf32>
    %27 = arith.mulf %24, %26 : vector<8x64xf32>
    %cst_20 = arith.constant dense<0.000000e+00> : vector<8xf32>
    %28 = vector.multi_reduction <add>, %27, %cst_20 [1] : vector<8x64xf32> to vector<8xf32>
    %29 = vector.shape_cast %28 : vector<8xf32> to vector<8x1xf32>
    %c0_21 = arith.constant 0 : index
    %30 = memref.load %arg9[%c0_21] : memref<1xf32, #tpu.memory_space<smem>>
    %31 = vector.broadcast %30 : f32 to vector<8x1xf32>
    %32 = arith.addf %29, %31 : vector<8x1xf32>
    %33 = math.absf %32 : vector<8x1xf32>
    %cst_22 = arith.constant 0.000000e+00 : f32
    %34 = vector.broadcast %cst_22 : f32 to vector<8x1xf32>
    %35 = arith.subf %34, %33 : vector<8x1xf32>
    %36 = math.exp %35 : vector<8x1xf32>
    %cst_23 = arith.constant 1.000000e+00 : f32
    %37 = vector.broadcast %cst_23 : f32 to vector<8x1xf32>
    %38 = arith.addf %37, %36 : vector<8x1xf32>
    %39 = tpu.reciprocal %38 {approx = true} : vector<8x1xf32> -> vector<8x1xf32>
    %cst_24 = arith.constant 0.000000e+00 : f32
    %40 = vector.broadcast %cst_24 : f32 to vector<8x1xf32>
    %41 = arith.cmpf oge, %32, %40 : vector<8x1xf32>
    %cst_25 = arith.constant 1.000000e+00 : f32
    %42 = vector.broadcast %cst_25 : f32 to vector<8x1xf32>
    %43 = arith.subf %42, %39 : vector<8x1xf32>
    %44 = arith.select %41, %39, %43 : vector<8x1xi1>, vector<8x1xf32>
    %c0_26 = arith.constant 0 : index
    %c0_27 = arith.constant 0 : index
    %45 = vector.load %arg10[%c0_26, %c0_27] : memref<8x1xf32, #tpu.memory_space<vmem>>, vector<8x1xf32>
    tpu.vector_store %arg10[%c0_26, %c0_27], %44 {strides = array<i32>} : memref<8x1xf32, #tpu.memory_space<vmem>>, vector<8x1xf32>,
    return
  }
  func.func @transform_0(%arg0: i32) -> (i32, i32) {
    %c0_i32 = arith.constant 0 : i32
    %c0_i32_0 = arith.constant 0 : i32
    return %arg0, %c0_i32 : i32, i32
  }
  func.func @transform_1(%arg0: i32) -> (i32, i32) {
    %c0_i32 = arith.constant 0 : i32
    %c0_i32_0 = arith.constant 0 : i32
    %c0_i32_1 = arith.constant 0 : i32
    return %c0_i32, %c0_i32_0 : i32, i32
  }
  func.func @transform_2(%arg0: i32) -> (i32, i32) {
    %c0_i32 = arith.constant 0 : i32
    %c0_i32_0 = arith.constant 0 : i32
    %c0_i32_1 = arith.constant 0 : i32
    return %c0_i32, %c0_i32_0 : i32, i32
  }
  func.func @transform_3(%arg0: i32) -> (i32, i32) {
    %c0_i32 = arith.constant 0 : i32
    %c0_i32_0 = arith.constant 0 : i32
    %c0_i32_1 = arith.constant 0 : i32
    return %c0_i32, %c0_i32_0 : i32, i32
  }
  func.func @transform_4(%arg0: i32) -> (i32, i32) {
    %c0_i32 = arith.constant 0 : i32
    %c0_i32_0 = arith.constant 0 : i32
    %c0_i32_1 = arith.constant 0 : i32
    return %c0_i32, %c0_i32_0 : i32, i32
  }
  func.func @transform_5(%arg0: i32) -> (i32, i32) {
    %c0_i32 = arith.constant 0 : i32
    %c0_i32_0 = arith.constant 0 : i32
    %c0_i32_1 = arith.constant 0 : i32
    return %c0_i32, %c0_i32_0 : i32, i32
  }
  func.func @transform_6(%arg0: i32) -> (i32, i32) {
    %c0_i32 = arith.constant 0 : i32
    %c0_i32_0 = arith.constant 0 : i32
    %c0_i32_1 = arith.constant 0 : i32
    return %c0_i32, %c0_i32_0 : i32, i32
  }
  func.func @transform_7(%arg0: i32) -> (i32, i32) {
    %c0_i32 = arith.constant 0 : i32
    %c0_i32_0 = arith.constant 0 : i32
    %c0_i32_1 = arith.constant 0 : i32
    return %c0_i32, %c0_i32_0 : i32, i32
  }
  func.func @transform_8(%arg0: i32) -> i32 {
    %c0_i32 = arith.constant 0 : i32
    %c0_i32_0 = arith.constant 0 : i32
    return %c0_i32 : i32
  }
  func.func @transform_9(%arg0: i32) -> (i32, i32) {
    %c0_i32 = arith.constant 0 : i32
    %c0_i32_0 = arith.constant 0 : i32
    return %arg0, %c0_i32 : i32, i32
  }
}

</mosaic_0001>

<bundles_post_ra>
// kernel: tpu_custom_call.1
= control target key start
LH: loop header
LB: loop body
LE: loop exit
PB: predicated region body
PF: predicated region fallthrough
CT: control target
= control target key end

     0   :  { %15 = vsyncpa [#allocation4], 0  ;;  %s564_s12 = smov [#allocation3]   ;;  %s565_s14 = smov 64   ;;  %s689_s0 = inlined_call_operand.vmem [shape: f32[8,32], index: 0, kind: input, shape index: {}]   ;;  %s690_s1 = inlined_call_operand.vmem [shape: bf16[32,256], index: 1, kind: input, shape index: {}]   ;;  %s691_s2 = inlined_call_operand.vmem [shape: f32[1,256], index: 2, kind: input, shape index: {}]   ;;  %s692_s3 = inlined_call_operand.hbm [shape: bf16[256,128], index: 3, kind: input, shape index: {}]   ;;  %s693_s4 = inlined_call_operand.vmem [shape: f32[1,128], index: 4, kind: input, shape index: {}]   ;;  %s694_s5 = inlined_call_operand.vmem [shape: bf16[128,64], index: 5, kind: input, shape index: {}]   ;;  %s695_s6 = inlined_call_operand.vmem [shape: f32[1,64], index: 6, kind: input, shape index: {}]   ;;  %s696_s7 = inlined_call_operand.vmem [shape: f32[1,64], index: 7, kind: input, shape index: {}]   ;;  %s697_s8 = inlined_call_operand.<no memory space> [shape: f32[1], index: 8, kind: input, shape index: {}]   ;;  %s698_s9 = inlined_call_operand.vmem [shape: f32[8,1], index: 9, kind: output, shape index: {}]  }
   0x1   :  { %s26_s11 = sshll.u32 %s692_s3, 4  ;;  %s28_s13 = sshll.u32 %s564_s12, 4  ;;  %s27_s11 = int_to_ptr.hbm [resolvable:$true] %s26_s11  ;;  %s29_s13 = int_to_ptr.vmem [resolvable:$true] %s28_s13 }
   0x2   :  { %s566_s15 = smov 4  }
   0x3   :  { %34 = dma.hbm_to_vmem [thread:$0]  %s27_s11, 2048, %s29_s13, [#allocation4], %s565_s14, %s565_s14, %s566_s15  }
   0x4   :  { %562 = dma.done.wait [#allocation4], 2048  }
   0x5   :  { %563 = vsyncadd [#allocation4], 4294965248  ;;  %v396_v0 = vld [vmem:[%s690_s1 + $0x10] sm:$0xf]  ;;  %v503_v1 = vld [vmem:[%s690_s1 + $0x14] sm:$0xf0] }
   0x6   :  { %v388_v2 = vld [vmem:[%s690_s1] sm:$0xf]  ;;  %v397_v3 = vor.u32 %v503_v1, %v396_v0  ;;  %v501_v4 = vld [vmem:[%s690_s1 + $0x4] sm:$0xf0]  ;;  %v502_v5 = vld [vmem:[%s690_s1 + $0x14] sm:$0xf] }
   0x7   :  { %v398_v6 = vld [vmem:[%s690_s1 + $0x18] sm:$0xf0]  ;;  %v389_v7 = vor.u32 %v501_v4, %v388_v2  ;;  %v50_v8 = vld [vmem:[%s689_s0] sm:$0xff]  ;;  %v390_v13 = vld [vmem:[%s690_s1 + $0x8] sm:$0xf0]  ;;  %vm82_vm0 = vcmask 261120   ;;  %v368_v4 = vstv %s697_s8 }
   0x8   :  { %92 = vmatpush.bf16.msra.mxu1 %v397_v3  ;;  %v511_v9 = vld [vmem:[#allocation3 + $0x38] sm:$0xff]  ;;  %v401_v10 = vor.u32 %v502_v5, %v398_v6  ;;  %v500_v12 = vld [vmem:[%s690_s1 + $0x4] sm:$0xf]  ;;  %v510_v14 = vld [vmem:[#allocation3 + $0x30] sm:$0xff]  ;;  %v51_v15 = vpack.c.bf16 %v50_v8, %v50_v8  ;;  %vm363_vm1 = vcmask 523264   ;;  %vm379_vm2 = vcmask 7168  }
   0x9   :  { %v519_v11 = vld [vmem:[#allocation3 + $0x78] sm:$0xff]  ;;  %248 = vmatpush.bf16.msra.mxu2 %v511_v9  ;;  %v518_v16 = vld [vmem:[#allocation3 + $0x70] sm:$0xff]  ;;  %v393_v17 = vor.u32 %v500_v12, %v390_v13  ;;  %v509_v18 = vld [vmem:[#allocation3 + $0x28] sm:$0xff] }
   0xa   :  { %261 = vmatpush.bf16.msra.mxu3 %v519_v11  ;;  %v508_v19 = vld [vmem:[#allocation3 + $0x20] sm:$0xff]  ;;  %v507_v20 = vld [vmem:[#allocation3 + $0x18] sm:$0xff]  ;;  %v506_v21 = vld [vmem:[#allocation3 + $0x10] sm:$0xff] }
   0xb   :  { %v505_v22 = vld [vmem:[#allocation3 + $0x8] sm:$0xff]  ;;  %v504_v24 = vld [vmem:[#allocation3] sm:$0xff]  ;;  %v515_v26 = vld [vmem:[#allocation3 + $0x58] sm:$0xff] }
   0xc   :  { %93 = vmatpush.bf16.msra.mxu1 %v389_v7  ;;  %v517_v23 = vld [vmem:[#allocation3 + $0x68] sm:$0xff]  ;;  %v516_v25 = vld [vmem:[#allocation3 + $0x60] sm:$0xff]  ;;  %v514_v27 = vld [vmem:[#allocation3 + $0x50] sm:$0xff] }
   0xd   :  { %249 = vmatpush.bf16.msra.mxu2 %v510_v14  ;;  %v513_v28 = vld [vmem:[#allocation3 + $0x48] sm:$0xff]  ;;  %v512_v29 = vld [vmem:[#allocation3 + $0x40] sm:$0xff]  ;;  %v527_v30 = vld [vmem:[%s694_s5 + $0x38] sm:$0xff] }
   0xe   :  { %262 = vmatpush.bf16.msra.mxu3 %v518_v16  ;;  %v56_v31 = vld [vmem:[%s691_s2] sm:$0x3]  ;;  %344 = vmatpush.bf16.msra.mxu0 %v527_v30  ;;  %v526_v32 = vld [vmem:[%s694_s5 + $0x30] sm:$0xff]  ;;  %v525_v45 = vld [vmem:[%s694_s5 + $0x28] sm:$0xff] }
   0xf   :  { %402 = vmatmul.msk.bf16.vlgmr.msra.gmra.mxu1 %vm82_vm0, %v51_v15  ;;  %v58_v33 = vperm.slane %v56_v31, 0  ;;  %v59_v39 = vperm.slane %v56_v31, 1  ;;  %v524_v46 = vld [vmem:[%s694_s5 + $0x20] sm:$0xff]  ;;  %v523_v47 = vld [vmem:[%s694_s5 + $0x18] sm:$0xff]  ;;  %v522_v48 = vld [vmem:[%s694_s5 + $0x10] sm:$0xff] }
  0x10   :  { %105 = vmatpush.bf16.msrb.mxu1 %v401_v10  ;;  %v521_v49 = vld [vmem:[%s694_s5 + $0x8] sm:$0xff]  ;;  %v520_v50 = vld [vmem:[%s694_s5] sm:$0xff] }
  0x11   :  { %250 = vmatpush.bf16.msra.mxu2 %v509_v18  ;;  %v531_v53 = vld [vmem:[%s693_s4] ss:$0 sm:$0xff] }
  0x12   :  { %263 = vmatpush.bf16.msra.mxu3 %v517_v23  ;;  %345 = vmatpush.bf16.msra.mxu0 %v526_v32  ;;  %v532_v60 = vld [vmem:[%s695_s6] ss:$0 sm:$0xff] }
  0x13   :  { %v533_v63 = vld [vmem:[%s696_s7] ss:$0 sm:$0xff] }
  0x14   :  { %106 = vmatpush.bf16.msrb.mxu1 %v393_v17 }
  0x15   :  { %251 = vmatpush.bf16.msra.mxu2 %v508_v19 }
  0x16   :  { %264 = vmatpush.bf16.msra.mxu3 %v516_v25  ;;  %346 = vmatpush.bf16.msra.mxu0 %v525_v45 }
  0x19   :  { %252 = vmatpush.bf16.msra.mxu2 %v507_v20 }
  0x1a   :  { %265 = vmatpush.bf16.msra.mxu3 %v515_v26  ;;  %347 = vmatpush.bf16.msra.mxu0 %v524_v46 }
  0x1d   :  { %253 = vmatpush.bf16.msra.mxu2 %v506_v21 }
  0x1e   :  { %266 = vmatpush.bf16.msra.mxu3 %v514_v27  ;;  %348 = vmatpush.bf16.msra.mxu0 %v523_v47 }
  0x1f   :  { %403 = vmatmul.msk.bf16.vlgmr.msrb.gmra.mxu1 %vm82_vm0, %v51_v15 }
  0x21   :  { %254 = vmatpush.bf16.msra.mxu2 %v505_v22 }
  0x22   :  { %267 = vmatpush.bf16.msra.mxu3 %v513_v28  ;;  %349 = vmatpush.bf16.msra.mxu0 %v522_v48 }
  0x25   :  { %255 = vmatpush.bf16.msra.mxu2 %v504_v24 }
  0x26   :  { %268 = vmatpush.bf16.msra.mxu3 %v512_v29  ;;  %350 = vmatpush.bf16.msra.mxu0 %v521_v49 }
  0x2a   :  { %351 = vmatpush.bf16.msra.mxu0 %v520_v50 }
  0x8c   :  { %v95_v34 = vpop.f32.mrf.mxu1 }
  0x8d   :  { %v96_v35 = vadd.f32 %v95_v34, %v58_v33 }
  0x8f   :  { %v112_v36 = vmax.f32 %v96_v35, 0.0 }
  0x91   :  { %v114_v37 = vpack.c.bf16 %v112_v36, %v112_v36 }
  0x93   :  { %256 = vmatmul.bf16.vlgmr.msra.gmra.mxu2 %v114_v37 }
  0x94   :  { %v97_v38 = vpop.f32.mrf.mxu1 }
  0x9c   :  { %v108_v40 = vpop.f32.mrf.mxu1 }
  0x9d   :  { %v109_v41 = vadd.f32 %v108_v40, %v59_v39 }
  0x9f   :  { %v113_v42 = vmax.f32 %v109_v41, 0.0 }
  0xa1   :  { %v115_v43 = vpack.c.bf16 %v113_v42, %v113_v42 }
  0xa3   :  { %269 = vmatmul.bf16.vlgmr.msra.gmra.mxu3 %v115_v43 }
  0xa4   :  { %v110_v44 = vpop.f32.mrf.mxu1 }
 0x116   :  { %v257_v51 = vpop.f32.mrf.mxu2 }
 0x117   :  { %v258_v54 = vadd.f32 %v531_v53, %v257_v51 }
 0x11e   :  { %v259_v52 = vpop.f32.mrf.mxu2 }
 0x126   :  { %v270_v55 = vpop.f32.mrf.mxu3 }
 0x127   :  { %v271_v56 = vadd.f32 %v270_v55, %v258_v54 }
 0x129   :  { %v274_v57 = vmax.f32 %v271_v56, 0.0 }
 0x12b   :  { %v275_v58 = vpack.c.bf16 %v274_v57, %v274_v57 }
 0x12d   :  { %352 = vmatmul.bf16.vlgmr.msra.gmra.mxu0 %v275_v58 }
 0x12e   :  { %v272_v59 = vpop.f32.mrf.mxu3 }
 0x1aa   :  { %v353_v61 = vpop.f32.mrf.mxu0 }
 0x1ab   :  { %v354_v62 = vadd.f32 %v532_v60, %v353_v61 }
 0x1ad   :  { %v357_v0 = vmax.f32 %v354_v62, 0.0 }
 0x1af   :  { %v362_v1 = vmul.f32 %v533_v63, %v357_v0 }
 0x1b1   :  { %v364_v2 = vsel %vm363_vm1, %v362_v1, 0.0 }
 0x1b2   :  { %v355_v3 = vpop.f32.mrf.mxu0  ;;  %365 = vadd.xlane.f32.xlu0 %v364_v2 }
 0x225   :  { %v366_v5 = vpop.xlane.xlu0 %365 }
 0x226   :  { %v369_v6 = vadd.f32 %v368_v4, %v366_v5 }
 0x228   :  { %v370_v7 = vand.u32 2147483647, %v369_v6  ;;  %vm376_vm3 = vcmp.ge.f32.partialorder %v369_v6, 0.0 }
 0x22a   :  { %v371_v8 = vsub.f32 0.0, %v370_v7 }
 0x22c   :  { %v372_v9 = vmul.f32 1.442695, %v371_v8 }
 0x22e   :  { %534 = vpow2.f32 %v372_v9 }
 0x234   :  { %v535_v10 = vpop.eup %534 }
 0x235   :  { %v374_v11 = vadd.f32 1.0, %v535_v10 }
 0x237   :  { %536 = vrcp.f32 %v374_v11 }
 0x23d   :  { %v537_v12 = vpop.eup %536 }
 0x23e   :  { %v377_v13 = vsub.f32 1.0, %v537_v12 }
 0x240   :  { %v378_v14 = vsel %vm376_vm3, %v537_v12, %v377_v13 }
 0x241   :  { %380 = vst.msk [vmem:[%s698_s9] sm:$0xff] %vm379_vm2, %v378_v14 }
 0x242   :  { %385 = vsyncpa [#allocation4], 1 }

</bundles_post_ra>
